<compile_context>
chip_gen: v5e
topology: v5e:2x2
jax: 0.10.0
libtpu: 0.0.40
codegen_flags: <defaults>
</compile_context>

<pallas_src>
import jax
import jax.numpy as jnp
from jax.experimental import pallas as pl
from jax.experimental.pallas import tpu as pltpu


# Below this total size the fixed pallas_call overhead dwarfs the copy itself.
_SMALL_BYTES = 256 * 1024
# Target bytes per DMA descriptor on large copies (several in flight).
_CHUNK_TARGET_BYTES = 4 * 1024 * 1024
# Cap on DMA descriptors per source.
_MAX_CHUNKS_PER_SRC = 8
# Two programs so v7x's two TensorCores can each drive copies.
_NUM_PROGRAMS = 2


def _sublane_rows(dtype):
    """Rows per (sublane, lane) tile for this dtype: 8 f32, 16 bf16, 32 int8."""
    return max(8, 32 // jnp.dtype(dtype).itemsize)


def _chunk_copies(src_id, src_rows, dst_row0, row_bytes, sub):
    """Static copy plan for one source: list of (src_id, src_row, dst_row, rows).

    Peels an unaligned head so the bulk DMAs land on sublane-aligned destination
    rows, then splits the aligned body into ~_CHUNK_TARGET_BYTES chunks.
    """
    copies = []
    row = 0
    head = min((-dst_row0) % sub, src_rows)
    if head:
        copies.append((src_id, 0, dst_row0, head))
        row = head
    remaining = src_rows - row
    if remaining <= 0:
        return copies
    n_chunks = max(1, min(
        _MAX_CHUNKS_PER_SRC,
        (remaining * row_bytes + _CHUNK_TARGET_BYTES - 1) // _CHUNK_TARGET_BYTES))
    chunk_rows = -(-remaining // n_chunks)
    chunk_rows = -(-chunk_rows // sub) * sub  # keep chunk starts sublane-aligned
    while remaining > 0:
        rows = min(chunk_rows, remaining)
        copies.append((src_id, row, dst_row0 + row, rows))
        row += rows
        remaining -= rows
    return copies


def _make_concat_kernel(per_program):
    """Row-concat via direct HBM->HBM DMAs (no VMEM staging)."""

    def kernel(a_hbm, b_hbm, o_hbm, sems):
        pid = pl.program_id(0)
        srcs = (a_hbm, b_hbm)
        for p, copies in enumerate(per_program):
            if not copies:
                continue

            @pl.when(pid == p)
            def _(copies=copies, p=p):
                descs = []
                # Start every DMA of this program back-to-back so they overlap
                # on the DMA engines, then wait on all of them.
                for i, (src_id, sr, dr, rows) in enumerate(copies):
                    cp = pltpu.make_async_copy(
                        srcs[src_id].at[pl.ds(sr, rows)],
                        o_hbm.at[pl.ds(dr, rows)],
                        sems.at[p, i])
                    cp.start()
                    descs.append(cp)
                for cp in descs:
                    cp.wait()

    return kernel


def two_stage_context_forward(inst_features, rel_union_features, proposals=None,
                              rel_pair_inds=None, rel_gt_binarys=None,
                              logger=None, *, force_pallas=False):
    """Pallas implementation of Two_stageContext.forward (concat along dim 0)."""
    assert inst_features.ndim == 2 and rel_union_features.ndim == 2
    assert inst_features.shape[1] == rel_union_features.shape[1]
    assert inst_features.dtype == rel_union_features.dtype
    del proposals, rel_pair_inds, rel_gt_binarys, logger  # unused, like the module

    n1, c = inst_features.shape
    n2, _ = rel_union_features.shape
    itemsize = jnp.dtype(inst_features.dtype).itemsize
    total_bytes = (n1 + n2) * c * itemsize

    # Small / degenerate inputs: skip the custom call entirely.
    if n1 == 0 or n2 == 0 or (not force_pallas and total_bytes < _SMALL_BYTES):
        return jnp.concatenate([inst_features, rel_union_features], axis=0)

    # Build the static copy plan (trace-time Python; everything below is static).
    sub = _sublane_rows(inst_features.dtype)
    row_bytes = c * itemsize
    all_copies = (_chunk_copies(0, n1, 0, row_bytes, sub)
                  + _chunk_copies(1, n2, n1, row_bytes, sub))

    # Greedy load-balance chunks across the two programs (bytes per TC on v7x).
    buckets = [[] for _ in range(_NUM_PROGRAMS)]
    loads = [0] * _NUM_PROGRAMS
    for cp in sorted(all_copies, key=lambda t: t[3], reverse=True):
        p = loads.index(min(loads))
        buckets[p].append(cp)
        loads[p] += cp[3]
    per_program = tuple(tuple(b) for b in buckets)
    num_sems = max(1, max(len(b) for b in buckets))

    return pl.pallas_call(
        _make_concat_kernel(per_program),
        out_shape=jax.ShapeDtypeStruct((n1 + n2, c), inst_features.dtype),
        grid=(_NUM_PROGRAMS,),
        # Raw HBM refs in and out: no auto-DMA, no VMEM tiles, no (8,128)
        # BlockSpec constraints, no double-buffer VMEM budget to blow on v7x.
        in_specs=[
            pl.BlockSpec(memory_space=pl.ANY),
            pl.BlockSpec(memory_space=pl.ANY),
        ],
        out_specs=pl.BlockSpec(memory_space=pl.ANY),
        scratch_shapes=[pltpu.SemaphoreType.DMA((_NUM_PROGRAMS, num_sems))],
        compiler_params=pltpu.CompilerParams(
            dimension_semantics=("parallel",)),
    )(inst_features, rel_union_features)


def _check(a, b, **kw):
    out = jax.block_until_ready(two_stage_context_forward(a, b, **kw))
    ref = jnp.concatenate([a, b], axis=0)
    assert out.shape == ref.shape and out.dtype == ref.dtype
    assert jnp.array_equal(out, ref)
    return out


if __name__ == "__main__":
    key = jax.random.PRNGKey(0)
    k1, k2, k3, k4, k5, k6 = jax.random.split(key, 6)

    # Small shapes consistent with the module ([num_inst, hidden], [num_rel, hidden]):
    # this takes the size-gated jnp.concatenate fast path.
    _check(jax.random.normal(k1, (8, 32), dtype=jnp.float32),
           jax.random.normal(k2, (16, 32), dtype=jnp.float32))

    # Same-scale shapes forced through the Pallas DMA kernel.
    _check(jax.random.normal(k3, (8, 128), dtype=jnp.float32),
           jax.random.normal(k4, (16, 128), dtype=jnp.float32),
           force_pallas=True)

    # Larger, sublane-unaligned split point (n1=300): takes the Pallas path
    # naturally and exercises head-peeling + 2-program load balancing.
    _check(jax.random.normal(k5, (300, 256), dtype=jnp.float32),
           jax.random.normal(k6, (724, 256), dtype=jnp.float32))

    print("KERNEL_OK")
</pallas_src>

<mosaic_0001>
module attributes {stable_mosaic.version = 11 : i64} {
  func.func @kernel(%arg0: i32, %arg1: memref<8x128xf32, #tpu.memory_space<any>>, %arg2: memref<16x128xf32, #tpu.memory_space<any>>, %arg3: memref<24x128xf32, #tpu.memory_space<any>>, %arg4: memref<2x1x!tpu.dma_semaphore, #tpu.memory_space<semaphore_mem>>) attributes {dimension_semantics = [#tpu.dimension_semantics<parallel>], iteration_bounds = array<i64: 2>, scalar_prefetch = 0 : i64, scratch_operands = 1 : i64, tpu.core_type = #tpu.core_type<tc>, window_params = [{}, {}, {}]} {
    %c0_i32 = arith.constant 0 : i32
    %0 = arith.cmpi eq, %arg0, %c0_i32 : i32
    %1 = arith.extui %0 : i1 to i32
    %c0_i32_0 = arith.constant 0 : i32
    %2 = arith.cmpi ne, %1, %c0_i32_0 : i32
    scf.if %2 {
      %c0_i32_2 = arith.constant 0 : i32
      %c0_i32_3 = arith.constant 0 : i32
      %c0_i32_4 = arith.constant 0 : i32
      %c0_i32_5 = arith.constant 0 : i32
      %6 = tpu.memref_slice %arg2[%c0_i32_4, %c0_i32_5] : memref<16x128xf32, #tpu.memory_space<any>> -> memref<16x128xf32, #tpu.memory_space<any>>
      %c8_i32 = arith.constant 8 : i32
      %c0_i32_6 = arith.constant 0 : i32
      %7 = tpu.memref_slice %arg3[%c8_i32, %c0_i32_6] : memref<24x128xf32, #tpu.memory_space<any>> -> memref<16x128xf32, #tpu.memory_space<any>>
      %8 = tpu.memref_slice %arg4[%c0_i32_2, %c0_i32_3] : memref<2x1x!tpu.dma_semaphore, #tpu.memory_space<semaphore_mem>> -> memref<1x1x!tpu.dma_semaphore, #tpu.memory_space<semaphore_mem>>
      %9 = tpu.memref_squeeze %8 : memref<1x1x!tpu.dma_semaphore, #tpu.memory_space<semaphore_mem>> -> memref<!tpu.dma_semaphore, #tpu.memory_space<semaphore_mem>>
      tpu.enqueue_dma source(%6 : memref<16x128xf32, #tpu.memory_space<any>>) target(%7 : memref<16x128xf32, #tpu.memory_space<any>>) target_semaphore(%9 : memref<!tpu.dma_semaphore, #tpu.memory_space<semaphore_mem>>)
      %c0_i32_7 = arith.constant 0 : i32
      %c0_i32_8 = arith.constant 0 : i32
      %c0_i32_9 = arith.constant 0 : i32
      %c0_i32_10 = arith.constant 0 : i32
      %10 = tpu.memref_slice %arg2[%c0_i32_9, %c0_i32_10] : memref<16x128xf32, #tpu.memory_space<any>> -> memref<16x128xf32, #tpu.memory_space<any>>
      %c8_i32_11 = arith.constant 8 : i32
      %c0_i32_12 = arith.constant 0 : i32
      %11 = tpu.memref_slice %arg3[%c8_i32_11, %c0_i32_12] : memref<24x128xf32, #tpu.memory_space<any>> -> memref<16x128xf32, #tpu.memory_space<any>>
      %12 = tpu.memref_slice %arg4[%c0_i32_7, %c0_i32_8] : memref<2x1x!tpu.dma_semaphore, #tpu.memory_space<semaphore_mem>> -> memref<1x1x!tpu.dma_semaphore, #tpu.memory_space<semaphore_mem>>
      %13 = tpu.memref_squeeze %12 : memref<1x1x!tpu.dma_semaphore, #tpu.memory_space<semaphore_mem>> -> memref<!tpu.dma_semaphore, #tpu.memory_space<semaphore_mem>>
      tpu.wait_dma2 semaphore(%13 : memref<!tpu.dma_semaphore, #tpu.memory_space<semaphore_mem>>) src(%10 : memref<16x128xf32, #tpu.memory_space<any>>) dst(%11 : memref<16x128xf32, #tpu.memory_space<any>>)
    } else {
    }
    %c1_i32 = arith.constant 1 : i32
    %3 = arith.cmpi eq, %arg0, %c1_i32 : i32
    %4 = arith.extui %3 : i1 to i32
    %c0_i32_1 = arith.constant 0 : i32
    %5 = arith.cmpi ne, %4, %c0_i32_1 : i32
    scf.if %5 {
      %c1_i32_2 = arith.constant 1 : i32
      %c0_i32_3 = arith.constant 0 : i32
      %c0_i32_4 = arith.constant 0 : i32
      %c0_i32_5 = arith.constant 0 : i32
      %6 = tpu.memref_slice %arg1[%c0_i32_4, %c0_i32_5] : memref<8x128xf32, #tpu.memory_space<any>> -> memref<8x128xf32, #tpu.memory_space<any>>
      %c0_i32_6 = arith.constant 0 : i32
      %c0_i32_7 = arith.constant 0 : i32
      %7 = tpu.memref_slice %arg3[%c0_i32_6, %c0_i32_7] : memref<24x128xf32, #tpu.memory_space<any>> -> memref<8x128xf32, #tpu.memory_space<any>>
      %8 = tpu.memref_slice %arg4[%c1_i32_2, %c0_i32_3] : memref<2x1x!tpu.dma_semaphore, #tpu.memory_space<semaphore_mem>> -> memref<1x1x!tpu.dma_semaphore, #tpu.memory_space<semaphore_mem>>
      %9 = tpu.memref_squeeze %8 : memref<1x1x!tpu.dma_semaphore, #tpu.memory_space<semaphore_mem>> -> memref<!tpu.dma_semaphore, #tpu.memory_space<semaphore_mem>>
      tpu.enqueue_dma source(%6 : memref<8x128xf32, #tpu.memory_space<any>>) target(%7 : memref<8x128xf32, #tpu.memory_space<any>>) target_semaphore(%9 : memref<!tpu.dma_semaphore, #tpu.memory_space<semaphore_mem>>)
      %c1_i32_8 = arith.constant 1 : i32
      %c0_i32_9 = arith.constant 0 : i32
      %c0_i32_10 = arith.constant 0 : i32
      %c0_i32_11 = arith.constant 0 : i32
      %10 = tpu.memref_slice %arg1[%c0_i32_10, %c0_i32_11] : memref<8x128xf32, #tpu.memory_space<any>> -> memref<8x128xf32, #tpu.memory_space<any>>
      %c0_i32_12 = arith.constant 0 : i32
      %c0_i32_13 = arith.constant 0 : i32
      %11 = tpu.memref_slice %arg3[%c0_i32_12, %c0_i32_13] : memref<24x128xf32, #tpu.memory_space<any>> -> memref<8x128xf32, #tpu.memory_space<any>>
      %12 = tpu.memref_slice %arg4[%c1_i32_8, %c0_i32_9] : memref<2x1x!tpu.dma_semaphore, #tpu.memory_space<semaphore_mem>> -> memref<1x1x!tpu.dma_semaphore, #tpu.memory_space<semaphore_mem>>
      %13 = tpu.memref_squeeze %12 : memref<1x1x!tpu.dma_semaphore, #tpu.memory_space<semaphore_mem>> -> memref<!tpu.dma_semaphore, #tpu.memory_space<semaphore_mem>>
      tpu.wait_dma2 semaphore(%13 : memref<!tpu.dma_semaphore, #tpu.memory_space<semaphore_mem>>) src(%10 : memref<8x128xf32, #tpu.memory_space<any>>) dst(%11 : memref<8x128xf32, #tpu.memory_space<any>>)
    } else {
    }
    return
  }
}

</mosaic_0001>

<bundles_post_ra>
// kernel: tpu_custom_call.1
= control target key start
LH: loop header
LB: loop body
LE: loop exit
PB: predicated region body
PF: predicated region fallthrough
CT: control target
= control target key end

     0   :  { %s107_s9 = smov 0   ;;  %s143_s0 = inlined_call_operand.hbm [shape: f32[8,128], index: 0, kind: input, shape index: {}]   ;;  %s144_s1 = inlined_call_operand.hbm [shape: f32[16,128], index: 1, kind: input, shape index: {}]   ;;  %s145_s2 = inlined_call_operand.hbm [shape: f32[24,128], index: 2, kind: output, shape index: {}]  }
   0x1 LB: > { %s18_s12 = scalar_lea.hbm %s145_s2, 8  ;;  %s23_s15 = sshll.u32 %s144_s1, 4  ;;  %s109_s9 = sphi %s107_s9, %s12_s9   ;;  %s24_s15 = int_to_ptr.hbm [resolvable:$true] %s23_s15 }
   0x2   : > { %p80_p0 = scmp.eq.s32.totalorder %s109_s9, 0  ;;  %s25_s16 = sshll.u32 %s18_s12, 4  ;;  %s26_s16 = int_to_ptr.hbm [resolvable:$true] %s25_s16 }
   0x3   : > { %s111_s17 = smov [#allocation2]   ;;  %s112_s18 = smov [#allocation3]  }
   0x4   : > { %s113_s19 = smov 0  }
   0x5   : > { %75 = dma.general (%p80_p0), %s24_s15, 256, %s26_s16, %s111_s17, %s112_s18, [#allocation4], %s113_s19, 0  }
   0x6   : > { %100 = dma.done.wait (%p80_p0), [#allocation2], 256 }
   0x7   : > { %102 = vsyncadd (%p80_p0), [#allocation2], 4294967040  ;;  %p81_p1 = scmp.eq.s32.totalorder %s109_s9, 1  ;;  %s42_s22 = sshll.u32 %s143_s0, 4  ;;  %s43_s22 = int_to_ptr.hbm [resolvable:$true] %s42_s22 }
   0x8   : > { %s44_s25 = sshll.u32 %s145_s2, 4  ;;  %s114_s26 = smov [#allocation2 + $0x1]   ;;  %s45_s25 = int_to_ptr.hbm [resolvable:$true] %s44_s25 }
   0x9   : > { %s115_s27 = smov [#allocation5]  }
   0xa   : > { %78 = dma.general (%p81_p1), %s43_s22, 128, %s45_s25, %s114_s26, %s115_s27, [#allocation6], %s113_s19, 0  }
   0xb   : > { %104 = dma.done.wait (%p81_p1), [#allocation2 + $0x1], 128 }
   0xc   : > { %106 = vsyncadd (%p81_p1), [#allocation2 + $0x1], 4294967168  ;;  %s12_s9 = sadd.s32 1, %s109_s9  }
   0xd   : > { %p9_p2 = scmp.ge.s32.totalorder %s12_s9, 2  }
   0xf   :  { %11 = sbr.rel (!%p9_p2) target bundleno = 1 (0x1), region = 30 }
  0x14   :  { %52 = vsyncmov [#allocation2] }
  0x17   :  { %s53_s28 = vpop.sfrf %52 }
  0x18   :  { %p72_p3 = scmp.ne.s32.totalorder %s53_s28, 0 }
  0x1a   :  { %57 = shalt.err (%p72_p3)  }
  0x1b   :  { %59 = vsyncmov [#allocation2 + $0x1] }
  0x1e   :  { %s60_s29 = vpop.sfrf %59 }
  0x1f   :  { %p73_p4 = scmp.ne.s32.totalorder %s60_s29, 0 }
  0x21   :  { %64 = shalt.err (%p73_p4)  }

</bundles_post_ra>
